<compile_context>
chip_gen: v7x
topology: tpu7x:2x2x1
jax: 0.10.0
libtpu: 0.0.40
codegen_flags: <defaults>
</compile_context>

<pallas_src>
import jax
import jax.numpy as jnp
import numpy as np
from jax.experimental import pallas as pl
from jax.experimental.pallas import tpu as pltpu

NUM_NEURONS = 302
NUM_SENSORY = 60
NUM_MOTOR = 94
NUM_LIGHT = 30
NUM_VIBRATION = 30
N_PAD = 384  # next multiple of 128 >= 302

# Rows of the packed "small" slab (rest of the 8 rows are zero padding).
ROW_STATE = 0   # initial neuron states (padded)
ROW_SCALE = 1   # light_scale in lanes 0..29, vibration_scale in 30..59
ROW_DTT = 2     # dt / tau (padded with 0 so padded lanes stay inert)
SMALL_ROWS = 8


def _brain_kernel(small_ref, sens_ref, w_ref, traj_ref, state_ref):
    t = pl.program_id(0)

    # Load the persistent state into scratch on the first step only.
    @pl.when(t == 0)
    def _():
        state_ref[...] = small_ref[ROW_STATE:ROW_STATE + 1, :]

    scale = small_ref[ROW_SCALE:ROW_SCALE + 1, :]          # (1, N_PAD)
    dt_over_tau = small_ref[ROW_DTT:ROW_DTT + 1, :]        # (1, N_PAD)

    # Sensory injection in-kernel: raw inputs * precomputed scale row.
    s = state_ref[...] + sens_ref[0] * scale               # (1, N_PAD)

    # One (1, N_PAD) x (N_PAD, 2*N_PAD) MXU matmul covering both synapse
    # matrices (diagonals already zeroed at prepare time); split columns.
    both = jnp.dot(s, w_ref[...], preferred_element_type=jnp.float32)
    chem_in = jnp.maximum(both[:, :N_PAD], 0.0)
    gap_in = both[:, N_PAD:]

    # Euler step with precomputed dt/tau (multiply, no divide).
    new_s = jnp.maximum(s + (-s + chem_in + gap_in) * dt_over_tau, 0.0)
    state_ref[...] = new_s
    traj_ref[0] = new_s


def prepare_params(params, dt=0.1):
    """One-time prep: mask diagonals, pad, concatenate weights, pack smalls."""
    p = N_PAD - NUM_NEURONS
    mask = 1.0 - jnp.eye(NUM_NEURONS, dtype=jnp.float32)
    wc = jnp.pad(params["chemical_synapses"] * mask, ((0, p), (0, p)))
    wg = jnp.pad(params["gap_junctions"] * mask, ((0, p), (0, p)))
    w_cat = jnp.concatenate([wc, wg], axis=1)              # (N_PAD, 2*N_PAD)

    small = jnp.zeros((SMALL_ROWS, N_PAD), jnp.float32)
    small = small.at[ROW_STATE, :NUM_NEURONS].set(params["neuron_states"])
    small = small.at[ROW_SCALE, :NUM_LIGHT].set(params["light_scale"])
    small = small.at[ROW_SCALE, NUM_LIGHT:NUM_SENSORY].set(
        params["vibration_scale"])
    small = small.at[ROW_DTT, :NUM_NEURONS].set(dt / params["tau"])
    return {"w_cat": w_cat, "small": small}


@jax.jit
def celegans_rollout(light_seq, vibration_seq, prepared):
    """T fused Euler steps (each step == one PyTorch forward() call).

    light_seq: (T, 30), vibration_seq: (T, 30).
    Returns (motor trajectory (T, 94), final padded state (1, N_PAD)).
    """
    T = light_seq.shape[0]

    # Raw sensory samples laid into lanes 0..59; scaling happens in-kernel.
    sens = jnp.zeros((T, 1, N_PAD), jnp.float32)
    sens = sens.at[:, 0, :NUM_LIGHT].set(light_seq.astype(jnp.float32))
    sens = sens.at[:, 0, NUM_LIGHT:NUM_SENSORY].set(
        vibration_seq.astype(jnp.float32))

    traj = pl.pallas_call(
        _brain_kernel,
        out_shape=jax.ShapeDtypeStruct((T, 1, N_PAD), jnp.float32),
        grid_spec=pltpu.PrefetchScalarGridSpec(
            num_scalar_prefetch=0,
            grid=(T,),
            in_specs=[
                # Packed small slab: constant block -> resident in VMEM.
                pl.BlockSpec((SMALL_ROWS, N_PAD), lambda t: (0, 0)),
                # Per-step raw sensory row.
                pl.BlockSpec((1, 1, N_PAD), lambda t: (t, 0, 0)),
                # Weight slab: constant block index -> DMA'd once, resident.
                pl.BlockSpec((N_PAD, 2 * N_PAD), lambda t: (0, 0)),
            ],
            out_specs=pl.BlockSpec((1, 1, N_PAD), lambda t: (t, 0, 0)),
            scratch_shapes=[pltpu.VMEM((1, N_PAD), jnp.float32)],
        ),
        compiler_params=pltpu.CompilerParams(
            dimension_semantics=("arbitrary",)),  # steps are sequential
    )(prepared["small"], sens, prepared["w_cat"])

    traj2d = traj[:, 0, :]
    motor_traj = traj2d[:, NUM_NEURONS - NUM_MOTOR:NUM_NEURONS]
    final_state = traj2d[-1:, :]
    return motor_traj, final_state


def celegans_forward(light_input, vibration_input, prepared):
    """Single Euler step (exactly the PyTorch module's forward)."""
    motor, final_state = celegans_rollout(
        light_input[None], vibration_input[None], prepared)
    return motor[0], final_state


def init_params(key):
    k1, k2 = jax.random.split(key)
    return {
        "neuron_states": jnp.zeros((NUM_NEURONS,), jnp.float32),
        "chemical_synapses": jax.random.normal(
            k1, (NUM_NEURONS, NUM_NEURONS), jnp.float32) * 0.01,
        "gap_junctions": jax.random.normal(
            k2, (NUM_NEURONS, NUM_NEURONS), jnp.float32) * 0.01,
        "tau": jnp.ones((NUM_NEURONS,), jnp.float32) * 0.1,
        "light_scale": jnp.ones((NUM_LIGHT,), jnp.float32) * 0.1,
        "vibration_scale": jnp.ones((NUM_VIBRATION,), jnp.float32) * 0.1,
    }


def _reference_rollout(light_seq, vib_seq, params, dt=0.1):
    """Plain-JAX loop mirroring the PyTorch forward exactly, step by step."""
    states = params["neuron_states"]
    mask = jnp.ones((NUM_NEURONS, NUM_NEURONS), jnp.float32) - jnp.eye(
        NUM_NEURONS, dtype=jnp.float32)
    wc = params["chemical_synapses"] * mask
    wg = params["gap_junctions"] * mask
    outs = []
    for t in range(light_seq.shape[0]):
        sensory = jnp.zeros_like(states)
        sensory = sensory.at[:NUM_LIGHT].set(light_seq[t] * params["light_scale"])
        sensory = sensory.at[NUM_LIGHT:NUM_SENSORY].set(
            vib_seq[t] * params["vibration_scale"])
        s = states + sensory
        chem_in = jax.nn.relu(s @ wc)
        gap_in = s @ wg
        d_states = (-s + chem_in + gap_in) / params["tau"]
        states = jax.nn.relu(s + d_states * dt)
        outs.append(states[-NUM_MOTOR:])
    return jnp.stack(outs)


if __name__ == "__main__":
    key = jax.random.PRNGKey(0)
    k_param, k_light, k_vib = jax.random.split(key, 3)

    params = init_params(k_param)
    T = 8
    light_seq = jax.random.uniform(k_light, (T, NUM_LIGHT), jnp.float32)
    vib_seq = jax.random.uniform(k_vib, (T, NUM_VIBRATION), jnp.float32)

    prepared = prepare_params(params, dt=0.1)   # one-time, outside step path

    # Fused T-step rollout in a single pallas_call.
    motor_traj, final_state = celegans_rollout(light_seq, vib_seq, prepared)
    motor_traj = jax.block_until_ready(motor_traj)

    # Also exercise the single-step (module-equivalent) entry point.
    motor_1, _ = celegans_forward(light_seq[0], vib_seq[0], prepared)
    motor_1 = jax.block_until_ready(motor_1)

    ref_traj = jax.block_until_ready(
        _reference_rollout(light_seq, vib_seq, params))
    np.testing.assert_allclose(np.asarray(motor_traj), np.asarray(ref_traj),
                               rtol=1e-5, atol=1e-5)
    np.testing.assert_allclose(np.asarray(motor_1), np.asarray(ref_traj[0]),
                               rtol=1e-5, atol=1e-5)

    print("KERNEL_OK")
</pallas_src>

<mosaic_0001>
module attributes {stable_mosaic.version = 11 : i64} {
  func.func @_brain_kernel(%arg0: i32, %arg1: memref<8x384xf32, #tpu.memory_space<vmem>>, %arg2: memref<1x1x384xf32, #tpu.memory_space<vmem>>, %arg3: memref<384x768xf32, #tpu.memory_space<vmem>>, %arg4: memref<1x1x384xf32, #tpu.memory_space<vmem>>, %arg5: memref<1x384xf32, #tpu.memory_space<vmem>>) attributes {dimension_semantics = [#tpu.dimension_semantics<arbitrary>], iteration_bounds = array<i64: 8>, scalar_prefetch = 0 : i64, scratch_operands = 1 : i64, tpu.core_type = #tpu.core_type<tc>, window_params = [{pipeline_mode = #tpu.pipeline_mode<synchronous>, transform_indices = @transform_0, window_bounds = array<i64: 8, 384>}, {transform_indices = @transform_1, window_bounds = array<i64: 1, 1, 384>}, {pipeline_mode = #tpu.pipeline_mode<synchronous>, transform_indices = @transform_2, window_bounds = array<i64: 384, 768>}, {transform_indices = @transform_3, window_bounds = array<i64: 1, 1, 384>}]} {
    %c0_i32 = arith.constant 0 : i32
    %0 = arith.cmpi eq, %arg0, %c0_i32 : i32
    %1 = arith.extui %0 : i1 to i32
    %c0_i32_0 = arith.constant 0 : i32
    %2 = arith.cmpi ne, %1, %c0_i32_0 : i32
    scf.if %2 {
      %c0_17 = arith.constant 0 : index
      %c0_18 = arith.constant 0 : index
      %28 = vector.load %arg1[%c0_17, %c0_18] : memref<8x384xf32, #tpu.memory_space<vmem>>, vector<1x384xf32>
      %c0_19 = arith.constant 0 : index
      %c0_20 = arith.constant 0 : index
      %29 = vector.load %arg5[%c0_19, %c0_20] : memref<1x384xf32, #tpu.memory_space<vmem>>, vector<1x384xf32>
      tpu.vector_store %arg5[%c0_19, %c0_20], %28 {strides = array<i32>} : memref<1x384xf32, #tpu.memory_space<vmem>>, vector<1x384xf32>,
    } else {
    }
    %c1 = arith.constant 1 : index
    %c0 = arith.constant 0 : index
    %3 = vector.load %arg1[%c1, %c0] : memref<8x384xf32, #tpu.memory_space<vmem>>, vector<1x384xf32>
    %c2 = arith.constant 2 : index
    %c0_1 = arith.constant 0 : index
    %4 = vector.load %arg1[%c2, %c0_1] : memref<8x384xf32, #tpu.memory_space<vmem>>, vector<1x384xf32>
    %c0_2 = arith.constant 0 : index
    %c0_3 = arith.constant 0 : index
    %5 = vector.load %arg5[%c0_2, %c0_3] : memref<1x384xf32, #tpu.memory_space<vmem>>, vector<1x384xf32>
    %c0_4 = arith.constant 0 : index
    %c0_5 = arith.constant 0 : index
    %c0_6 = arith.constant 0 : index
    %6 = vector.load %arg2[%c0_4, %c0_5, %c0_6] : memref<1x1x384xf32, #tpu.memory_space<vmem>>, vector<1x1x384xf32>
    %7 = vector.shape_cast %6 : vector<1x1x384xf32> to vector<1x384xf32>
    %8 = arith.mulf %7, %3 : vector<1x384xf32>
    %9 = arith.addf %5, %8 : vector<1x384xf32>
    %c0_7 = arith.constant 0 : index
    %c0_8 = arith.constant 0 : index
    %10 = vector.load %arg3[%c0_7, %c0_8] : memref<384x768xf32, #tpu.memory_space<vmem>>, vector<384x768xf32>
    %cst = arith.constant dense<0.000000e+00> : vector<1x768xf32>
    %11 = tpu.matmul %9, %10, %cst {dimension_numbers = #tpu.dot_dimension_numbers<[1], [0], [0], [1], [0, 0, 1, 1], [], []>} : vector<1x384xf32>, vector<384x768xf32>, vector<1x768xf32> -> vector<1x768xf32>
    %12 = vector.extract_strided_slice %11 {offsets = [0, 0], sizes = [1, 384], strides = [1, 1]} : vector<1x768xf32> to vector<1x384xf32>
    %cst_9 = arith.constant 0.000000e+00 : f32
    %13 = vector.broadcast %cst_9 : f32 to vector<1x384xf32>
    %14 = arith.maximumf %12, %13 : vector<1x384xf32>
    %15 = vector.extract_strided_slice %11 {offsets = [0, 384], sizes = [1, 384], strides = [1, 1]} : vector<1x768xf32> to vector<1x384xf32>
    %cst_10 = arith.constant 0.000000e+00 : f32
    %16 = vector.broadcast %cst_10 : f32 to vector<1x384xf32>
    %17 = arith.subf %16, %9 : vector<1x384xf32>
    %18 = arith.addf %17, %14 : vector<1x384xf32>
    %19 = arith.addf %18, %15 : vector<1x384xf32>
    %20 = arith.mulf %19, %4 : vector<1x384xf32>
    %21 = arith.addf %9, %20 : vector<1x384xf32>
    %cst_11 = arith.constant 0.000000e+00 : f32
    %22 = vector.broadcast %cst_11 : f32 to vector<1x384xf32>
    %23 = arith.maximumf %21, %22 : vector<1x384xf32>
    %c0_12 = arith.constant 0 : index
    %c0_13 = arith.constant 0 : index
    %24 = vector.load %arg5[%c0_12, %c0_13] : memref<1x384xf32, #tpu.memory_space<vmem>>, vector<1x384xf32>
    tpu.vector_store %arg5[%c0_12, %c0_13], %23 {strides = array<i32>} : memref<1x384xf32, #tpu.memory_space<vmem>>, vector<1x384xf32>,
    %c0_14 = arith.constant 0 : index
    %c0_15 = arith.constant 0 : index
    %c0_16 = arith.constant 0 : index
    %25 = vector.load %arg4[%c0_14, %c0_15, %c0_16] : memref<1x1x384xf32, #tpu.memory_space<vmem>>, vector<1x1x384xf32>
    %26 = vector.shape_cast %25 : vector<1x1x384xf32> to vector<1x384xf32>
    %27 = vector.shape_cast %23 : vector<1x384xf32> to vector<1x1x384xf32>
    tpu.vector_store %arg4[%c0_14, %c0_15, %c0_16], %27 {strides = array<i32>} : memref<1x1x384xf32, #tpu.memory_space<vmem>>, vector<1x1x384xf32>,
    return
  }
  func.func @transform_0(%arg0: i32) -> (i32, i32) {
    %c0_i32 = arith.constant 0 : i32
    %c0_i32_0 = arith.constant 0 : i32
    %c0_i32_1 = arith.constant 0 : i32
    return %c0_i32, %c0_i32_0 : i32, i32
  }
  func.func @transform_1(%arg0: i32) -> (i32, i32, i32) {
    %c0_i32 = arith.constant 0 : i32
    %c0_i32_0 = arith.constant 0 : i32
    %c0_i32_1 = arith.constant 0 : i32
    return %arg0, %c0_i32, %c0_i32_0 : i32, i32, i32
  }
  func.func @transform_2(%arg0: i32) -> (i32, i32) {
    %c0_i32 = arith.constant 0 : i32
    %c0_i32_0 = arith.constant 0 : i32
    %c0_i32_1 = arith.constant 0 : i32
    return %c0_i32, %c0_i32_0 : i32, i32
  }
  func.func @transform_3(%arg0: i32) -> (i32, i32, i32) {
    %c0_i32 = arith.constant 0 : i32
    %c0_i32_0 = arith.constant 0 : i32
    %c0_i32_1 = arith.constant 0 : i32
    return %arg0, %c0_i32, %c0_i32_0 : i32, i32, i32
  }
}

</mosaic_0001>

<bundles_post_ra>
// kernel: celegans_rollout.1
= control target key start
LH: loop header
LB: loop body
LE: loop exit
PB: predicated region body
PF: predicated region fallthrough
CT: control target
= control target key end

     0   :  { %8 = vsyncpa [#allocation4], 0  ;;  %s1659_s0 = inlined_call_operand.hbm [shape: f32[8,384], index: 0, kind: input, shape index: {}]   ;;  %s1660_s1 = inlined_call_operand.vmem [shape: f32[8,1,384], index: 1, kind: input, shape index: {}]   ;;  %s1661_s2 = inlined_call_operand.hbm [shape: f32[384,768], index: 2, kind: input, shape index: {}]   ;;  %s1662_s3 = inlined_call_operand.vmem [shape: f32[8,1,384], index: 3, kind: output, shape index: {}]  }
   0x1   :  { %9 = vsyncpa [#allocation6], 0  ;;  %s1524_s12 = smov 0  }
   0x2 LB: > { %s1530_s13 = sadd.s32 4294967295, %s1496_s12   ;;  %p1088_p0 = scmp.ge.s32.totalorder %s1496_s12, 1  ;;  %s1496_s12 = sphi %s1524_s12, %s15_s12  }
   0x3   : > { %p114_p1 = scmp.lt.s32.totalorder %s1496_s12, 9  ;;  %p1663_p3 = scmp.eq.s32.totalorder %s1530_s13, 0 }
   0x4   : > { %s1498_s14 = smov [#allocation3]   ;;  %s1499_s17 = smov [#allocation5]  }
   0x5   : > { %s127_s15 = sshll.u32 %s1498_s14, 4  ;;  %p1536_p4 = pnand %p1088_p0, %p114_p1  ;;  %s128_s15 = int_to_ptr.vmem [resolvable:$true] %s127_s15 }
   0x6   : > { %s137_s18 = sshll.u32 %s1499_s17, 4  ;;  %s1426_s22 = scalar_lea.hbm %s1659_s0, 384  ;;  %s1548_s18 = int_to_ptr.vmem [resolvable:$true] %s137_s18 }
   0x7   : > { %s1665_s16 = scalar_select %p1536_p4, 1, 0 }
   0x8   : > { %p1401_p5 = pneg %p1536_p4  ;;  %p1427_p7 = scmp.ne.s32.totalorder %s1659_s0, %s1426_s22 }
   0x9   : > { %p1433_p11 = scmp.lt.u32.totalorder %s1426_s22, %s1659_s0 }
   0xa   : > { %p1544_p6 = pnand %p1663_p3, %p1401_p5 }
   0xc   : > { %p1428_p8 = pneg %p1544_p6 }
   0xe   : > { %p1429_p9 = pnand %p1428_p8, %p1427_p7 }
  0x10   : > { %p1430_p10 = pneg %p1429_p9 }
  0x12   : > { %p1435_p12 = pnand %p1433_p11, %p1430_p10 }
  0x14   : > { %1438 = shalt.err (!%p1435_p12)
}
  0x15   : > { %s1439_s27 = scalar_lea.vmem %s128_s15, 384  ;;  %p1447_p5 = scmp.lt.s32.totalorder %s128_s15, %s128_s15 }
  0x16   : > { %p1440_p13 = scmp.ne.s32.totalorder %s128_s15, %s1439_s27  ;;  %p1448_p2 = scmp.lt.s32.totalorder %s1439_s27, %s1439_s27 }
  0x18   : > { %p1442_p0 = pnand %p1440_p13, %p1428_p8  ;;  %p1449_p3 = por %p1448_p2, %p1447_p5 }
  0x1a   : > { %p1443_p1 = pneg %p1442_p0 }
  0x1c   : > { %p1450_p4 = pnand %p1449_p3, %p1443_p1 }
  0x1e   : > { %1453 = shalt.err (!%p1450_p4)
}
  0x1f   : > { %1404 = dma.hbm_to_vmem [thread:$0]  (!%p1544_p6), %s1659_s0, 384, %s128_s15, [#allocation4]  }
  0x20   : > { %s1454_s5 = scalar_lea.hbm %s1661_s2, 36864 }
  0x21   : > { %p1455_p7 = scmp.ne.s32.totalorder %s1661_s2, %s1454_s5  ;;  %p1461_p4 = scmp.lt.u32.totalorder %s1454_s5, %s1661_s2 }
  0x23   : > { %p1457_p2 = pnand %p1455_p7, %p1428_p8 }
  0x25   : > { %p1458_p3 = pneg %p1457_p2 }
  0x27   : > { %p1463_p9 = pnand %p1461_p4, %p1458_p3 }
  0x29   : > { %1466 = shalt.err (!%p1463_p9)
}
  0x2a   : > { %s1467_s10 = scalar_lea.vmem %s1548_s18, 36864  ;;  %p1475_p13 = scmp.lt.s32.totalorder %s1548_s18, %s1548_s18 }
  0x2b   : > { %p1468_p10 = scmp.ne.s32.totalorder %s1548_s18, %s1467_s10  ;;  %p1476_p0 = scmp.lt.s32.totalorder %s1467_s10, %s1467_s10 }
  0x2d   : > { %p1470_p11 = pnand %p1468_p10, %p1428_p8  ;;  %p1477_p1 = por %p1476_p0, %p1475_p13 }
  0x2f   : > { %p1471_p12 = pneg %p1470_p11 }
  0x31   : > { %p1478_p5 = pnand %p1477_p1, %p1471_p12 }
  0x33   : > { %1481 = shalt.err (!%p1478_p5)
}
  0x34   : > { %s1500_s11 = smov 768   ;;  %s1501_s14 = smov 48  }
  0x35   : > { %1407 = dma.hbm_to_vmem [thread:$0]  (!%p1544_p6), %s1661_s2, 36864, %s1548_s18, [#allocation6], %s1500_s11, %s1500_s11, %s1501_s14  }
  0x36   : > { %p1667_p7 = scmp.ne.s32.totalorder %s1665_s16, 0 }
  0x37   : > { %p1668_p8 = scmp.eq.s32.totalorder (!%p1667_p7), %s1530_s13, 0 }
  0x38   : > { %160 = sbr.rel (%p1667_p7) target bundleno = 472 (0x1d8), region = 32 }
  0x3f   : > { %1487 = dma.done.wait (%p1668_p8), [#allocation4], 384   ;;  %p1669_p2 = pmov %p1668_p8 }
  0x41   : > { %1489 = vsyncadd (%p1669_p2), [#allocation4], 4294966912  ;;  %p1670_p3 = pmov %p1669_p2 }
  0x42   : > { %p1671_p4 = pmov %p1669_p2 }
  0x43   : > { %1491 = dma.done.wait (%p1670_p3), [#allocation6], 36864  }
  0x44   : > { %1493 = vsyncadd (%p1671_p4), [#allocation6], 4294930432  ;;  %p186_p9 = scmp.lt.s32.totalorder %s1530_s13, 7  ;;  %p1672_p6 = scmp.ne.s32.totalorder %s1530_s13, 0 }
  0x45   : > { %v198_v0 = vld [vmem:[#allocation3] ss:$8 sm:$0x7] (!%p1672_p6)  ;;  %v199_v1 = vlaneseq (!%p1672_p6) }
  0x46   : > { %s187_s19 = scalar_select %p186_p9, %s1530_s13, 7 }
  0x47   : > { %197 = sbr.rel (%p1672_p6) target bundleno = 78 (0x4e), region = 44  ;;  %vm201_vm0 = vcmp.lt.s32.totalorder (!%p1672_p6), %v199_v1, 384 }
  0x48   : > { %s1392_s18 = smul.u32 3, %s187_s19  ;;  %203 = vst.msk [vmem:[#allocation2] sm:$0x7] (!%p1672_p6), %vm201_vm0, %v198_v0 }
  0x4a   : > { %s1612_s21 = scalar_lea.vmem %s1660_s1, %s1392_s18  ;;  %s1617_s24 = scalar_lea.vmem %s1662_s3, %s1392_s18 }
  0x4e PF: > { %v213_v2 = vld [vmem:[#allocation5 + $0x8] sm:$0xff]  ;;  %v219_v3 = vld [vmem:[#allocation5 + $0x38] sm:$0xff]  ;;  %v212_v4 = vld [vmem:[#allocation5] sm:$0xff]  ;;  %v1502_v9 = vmov 0.0  }
  0x4f   : > { %v1098_v5 = vpack.c.bf16 %v219_v3, %v213_v2  ;;  %v218_v6 = vld [vmem:[#allocation5 + $0x30] sm:$0xff]  ;;  %v405_v7 = vld [vmem:[#allocation5 + $0x608] sm:$0xff]  ;;  %v411_v8 = vld [vmem:[#allocation5 + $0x638] sm:$0xff]  ;;  %651 = vmatprep.mubr.f32.mxu0 %v1502_v9 }
  0x50   : > { %v1100_v10 = vpack.c.bf16 %v218_v6, %v212_v4  ;;  %v1162_v11 = vpack.c.bf16 %v411_v8, %v405_v7  ;;  %v404_v12 = vld [vmem:[#allocation5 + $0x600] sm:$0xff]  ;;  %v410_v13 = vld [vmem:[#allocation5 + $0x630] sm:$0xff]  ;;  %v225_v14 = vld [vmem:[#allocation5 + $0x68] sm:$0xff] }
  0x51   : > { %1099 = vmatprep.subr.bf16.mxu1 %v1098_v5  ;;  %v1164_v15 = vpack.c.bf16 %v410_v13, %v404_v12  ;;  %v231_v16 = vld [vmem:[#allocation5 + $0x98] sm:$0xff]  ;;  %v224_v17 = vld [vmem:[#allocation5 + $0x60] sm:$0xff]  ;;  %v230_v18 = vld [vmem:[#allocation5 + $0x90] sm:$0xff] }
  0x52   : > { %1101 = vmatpush1.bf16.msra.mxu1 %v1100_v10  ;;  %1163 = vmatprep.subr.bf16.mxu0 %v1162_v11  ;;  %v1102_v19 = vpack.c.bf16 %v231_v16, %v225_v14  ;;  %v1104_v20 = vpack.c.bf16 %v230_v18, %v224_v17  ;;  %v417_v21 = vld [vmem:[#allocation5 + $0x668] sm:$0xff]  ;;  %v423_v22 = vld [vmem:[#allocation5 + $0x698] sm:$0xff]  ;;  %v416_v23 = vld [vmem:[#allocation5 + $0x660] sm:$0xff] }
  0x53   : > { %1165 = vmatpush1.bf16.msra.mxu0 %v1164_v15  ;;  %v1166_v24 = vpack.c.bf16 %v423_v22, %v417_v21  ;;  %v422_v25 = vld [vmem:[#allocation5 + $0x690] sm:$0xff]  ;;  %v237_v26 = vld [vmem:[#allocation5 + $0xc8] sm:$0xff]  ;;  %v243_v27 = vld [vmem:[#allocation5 + $0xf8] sm:$0xff]  ;;  %v501_v15 = vlaneseq }
  0x54   : > { %1103 = vmatprep.subr.bf16.mxu1 %v1102_v19  ;;  %v1168_v28 = vpack.c.bf16 %v422_v25, %v416_v23  ;;  %v1106_v29 = vpack.c.bf16 %v243_v27, %v237_v26  ;;  %v236_v30 = vld [vmem:[#allocation5 + $0xc0] sm:$0xff]  ;;  %v242_v31 = vld [vmem:[#allocation5 + $0xf0] sm:$0xff]  ;;  %v429_v32 = vld [vmem:[#allocation5 + $0x6c8] sm:$0xff] }
  0x55   : > { %1167 = vmatprep.subr.bf16.mxu0 %v1166_v24  ;;  %v435_v33 = vld [vmem:[#allocation5 + $0x6f8] sm:$0xff]  ;;  %v428_v34 = vld [vmem:[#allocation5 + $0x6c0] sm:$0xff]  ;;  %v434_v35 = vld [vmem:[#allocation5 + $0x6f0] sm:$0xff]  ;;  %v1108_v36 = vpack.c.bf16 %v242_v31, %v236_v30  ;;  %v1624_v31 = vshrl.u32 %v501_v15, 7  ;;  %vm1007_vm1 = vcmp.lt.s32.totalorder %v501_v15, 384 }
  0x56   : > { %1105 = vmatpush1.bf16.msra.mxu1 %v1104_v20  ;;  %v1170_v37 = vpack.c.bf16 %v435_v33, %v429_v32  ;;  %v249_v38 = vld [vmem:[#allocation5 + $0x128] sm:$0xff]  ;;  %v255_v39 = vld [vmem:[#allocation5 + $0x158] sm:$0xff]  ;;  %v248_v40 = vld [vmem:[#allocation5 + $0x120] sm:$0xff]  ;;  %v1172_v41 = vpack.c.bf16 %v434_v35, %v428_v34 }
  0x57   : > { %1169 = vmatpush1.bf16.msra.mxu0 %v1168_v28  ;;  %1107 = vmatprep.subr.bf16.mxu1 %v1106_v29  ;;  %v1110_v42 = vpack.c.bf16 %v255_v39, %v249_v38  ;;  %v254_v43 = vld [vmem:[#allocation5 + $0x150] sm:$0xff]  ;;  %v441_v44 = vld [vmem:[#allocation5 + $0x728] sm:$0xff]  ;;  %v447_v45 = vld [vmem:[#allocation5 + $0x758] sm:$0xff] }
  0x58   : > { %1171 = vmatprep.subr.bf16.mxu0 %v1170_v37  ;;  %v1174_v46 = vpack.c.bf16 %v447_v45, %v441_v44  ;;  %v440_v47 = vld [vmem:[#allocation5 + $0x720] sm:$0xff]  ;;  %v446_v48 = vld [vmem:[#allocation5 + $0x750] sm:$0xff]  ;;  %v261_v49 = vld [vmem:[#allocation5 + $0x188] sm:$0xff]  ;;  %v1112_v51 = vpack.c.bf16 %v254_v43, %v248_v40 }
  0x59   : > { %v267_v50 = vld [vmem:[#allocation5 + $0x1b8] sm:$0xff]  ;;  %v453_v52 = vld [vmem:[#allocation5 + $0x788] sm:$0xff]  ;;  %v1176_v54 = vpack.c.bf16 %v446_v48, %v440_v47  ;;  %v260_v56 = vld [vmem:[#allocation5 + $0x180] sm:$0xff]  ;;  %v511_v47 = vsub.s32 2, %v1624_v31 }
  0x5a   : > { %1109 = vmatpush1.bf16.msra.mxu1 %v1108_v36  ;;  %v459_v53 = vld [vmem:[#allocation5 + $0x7b8] sm:$0xff]  ;;  %v1114_v55 = vpack.c.bf16 %v267_v50, %v261_v49  ;;  %v266_v57 = vld [vmem:[#allocation5 + $0x1b0] sm:$0xff]  ;;  %v452_v58 = vld [vmem:[#allocation5 + $0x780] sm:$0xff] }
  0x5b   : > { %1173 = vmatpush1.bf16.msra.mxu0 %v1172_v41  ;;  %1111 = vmatprep.subr.bf16.mxu1 %v1110_v42  ;;  %v1178_v59 = vpack.c.bf16 %v459_v53, %v453_v52  ;;  %v458_v60 = vld [vmem:[#allocation5 + $0x7b0] sm:$0xff]  ;;  %v273_v61 = vld [vmem:[#allocation5 + $0x1e8] sm:$0xff]  ;;  %v279_v62 = vld [vmem:[#allocation5 + $0x218] sm:$0xff]  ;;  %v1116_v1 = vpack.c.bf16 %v266_v57, %v260_v56  ;;  %v507_v42 = vsub.s32 1, %v1624_v31 }
  0x5c   : > { %1175 = vmatprep.subr.bf16.mxu0 %v1174_v46  ;;  %v465_v63 = vld [vmem:[#allocation5 + $0x7e8] sm:$0xff]  ;;  %v471_v0 = vld [vmem:[#allocation5 + $0x818] sm:$0xff]  ;;  %v1180_v2 = vpack.c.bf16 %v458_v60, %v452_v58  ;;  %v1118_v3 = vpack.c.bf16 %v279_v62, %v273_v61  ;;  %v272_v4 = vld [vmem:[#allocation5 + $0x1e0] sm:$0xff] }
  0x5d   : > { %v278_v5 = vld [vmem:[#allocation5 + $0x210] sm:$0xff]  ;;  %v464_v6 = vld [vmem:[#allocation5 + $0x7e0] sm:$0xff]  ;;  %v1182_v7 = vpack.c.bf16 %v471_v0, %v465_v63  ;;  %v285_v10 = vld [vmem:[#allocation5 + $0x248] sm:$0xff] }
  0x5e   : > { %1113 = vmatpush1.bf16.msra.mxu1 %v1112_v51  ;;  %v470_v8 = vld [vmem:[#allocation5 + $0x810] sm:$0xff]  ;;  %v291_v11 = vld [vmem:[#allocation5 + $0x278] sm:$0xff]  ;;  %v477_v12 = vld [vmem:[#allocation5 + $0x848] sm:$0xff]  ;;  %v1120_v14 = vpack.c.bf16 %v278_v5, %v272_v4 }
  0x5f   : > { %1177 = vmatpush1.bf16.msra.mxu0 %v1176_v54  ;;  %1115 = vmatprep.subr.bf16.mxu1 %v1114_v55  ;;  %v483_v13 = vld [vmem:[#allocation5 + $0x878] sm:$0xff]  ;;  %v1184_v16 = vpack.c.bf16 %v470_v8, %v464_v6  ;;  %v1122_v17 = vpack.c.bf16 %v291_v11, %v285_v10  ;;  %v284_v18 = vld [vmem:[#allocation5 + $0x240] sm:$0xff]  ;;  %v290_v19 = vld [vmem:[#allocation5 + $0x270] sm:$0xff] }
  0x60   : > { %1179 = vmatprep.subr.bf16.mxu0 %v1178_v59  ;;  %v476_v20 = vld [vmem:[#allocation5 + $0x840] sm:$0xff]  ;;  %v1186_v21 = vpack.c.bf16 %v483_v13, %v477_v12  ;;  %v482_v22 = vld [vmem:[#allocation5 + $0x870] sm:$0xff]  ;;  %v297_v23 = vld [vmem:[#allocation5 + $0x2a8] sm:$0xff]  ;;  %v1124_v28 = vpack.c.bf16 %v290_v19, %v284_v18 }
  0x61   : > { %v303_v24 = vld [vmem:[#allocation5 + $0x2d8] sm:$0xff]  ;;  %v489_v25 = vld [vmem:[#allocation5 + $0x8a8] sm:$0xff]  ;;  %v296_v29 = vld [vmem:[#allocation5 + $0x2a0] sm:$0xff]  ;;  %v1188_v32 = vpack.c.bf16 %v482_v22, %v476_v20 }
  0x62   : > { %1117 = vmatpush1.bf16.msra.mxu1 %v1116_v1  ;;  %v495_v26 = vld [vmem:[#allocation5 + $0x8d8] sm:$0xff]  ;;  %v209_v30 = vld [vmem:[%s1612_s21] sm:$0x7]  ;;  %v1126_v33 = vpack.c.bf16 %v303_v24, %v297_v23  ;;  %v302_v34 = vld [vmem:[#allocation5 + $0x2d0] sm:$0xff] }
  0x63   : > { %1181 = vmatpush1.bf16.msra.mxu0 %v1180_v2  ;;  %1119 = vmatprep.subr.bf16.mxu1 %v1118_v3  ;;  %v205_v27 = vld [vmem:[#allocation3 + $0x1] ss:$8 sm:$0x7]  ;;  %v488_v35 = vld [vmem:[#allocation5 + $0x8a0] sm:$0xff]  ;;  %v1190_v38 = vpack.c.bf16 %v495_v26, %v489_v25  ;;  %v1128_v45 = vpack.c.bf16 %v302_v34, %v296_v29 }
  0x64   : > { %1183 = vmatprep.subr.bf16.mxu0 %v1182_v7  ;;  %v208_v36 = vld [vmem:[#allocation2] sm:$0x7]  ;;  %v210_v37 = vmul.f32 %v209_v30, %v205_v27  ;;  %v494_v39 = vld [vmem:[#allocation5 + $0x8d0] sm:$0xff]  ;;  %v309_v40 = vld [vmem:[#allocation5 + $0x308] sm:$0xff] }
  0x65   : > { %v315_v41 = vld [vmem:[#allocation5 + $0x338] sm:$0xff]  ;;  %v217_v43 = vld [vmem:[#allocation5 + $0x28] sm:$0xff]  ;;  %v1192_v48 = vpack.c.bf16 %v494_v39, %v488_v35  ;;  %v308_v50 = vld [vmem:[#allocation5 + $0x300] sm:$0xff] }
  0x66   : > { %1121 = vmatpush1.bf16.msra.mxu1 %v1120_v14  ;;  %v223_v44 = vld [vmem:[#allocation5 + $0x58] sm:$0xff]  ;;  %v1627_v46 = vadd.f32 %v210_v37, %v208_v36  ;;  %v1130_v49 = vpack.c.bf16 %v315_v41, %v309_v40  ;;  %v314_v51 = vld [vmem:[#allocation5 + $0x330] sm:$0xff]  ;;  %v216_v52 = vld [vmem:[#allocation5 + $0x20] sm:$0xff] }
  0x67   : > { %1185 = vmatpush1.bf16.msra.mxu0 %v1184_v16  ;;  %1123 = vmatprep.subr.bf16.mxu1 %v1122_v17  ;;  %v1290_v53 = vpack.c.bf16 %v223_v44, %v217_v43  ;;  %v222_v54 = vld [vmem:[#allocation5 + $0x50] sm:$0xff]  ;;  %v321_v55 = vld [vmem:[#allocation5 + $0x368] sm:$0xff]  ;;  %v327_v56 = vld [vmem:[#allocation5 + $0x398] sm:$0xff]  ;;  %v1132_v60 = vpack.c.bf16 %v314_v51, %v308_v50 }
  0x68   : > { %1187 = vmatprep.subr.bf16.mxu0 %v1186_v21  ;;  %v1631_v57 = vrot.slane %v1627_v46, %v507_v42  ;;  %v229_v58 = vld [vmem:[#allocation5 + $0x88] sm:$0xff]  ;;  %v235_v59 = vld [vmem:[#allocation5 + $0xb8] sm:$0xff]  ;;  %v1634_v61 = vrot.slane %v1627_v46, %v511_v47  ;;  %v1292_v62 = vpack.c.bf16 %v222_v54, %v216_v52  ;;  %v1134_v63 = vpack.c.bf16 %v327_v56, %v321_v55  ;;  %v320_v0 = vld [vmem:[#allocation5 + $0x360] sm:$0xff] }
  0x69   : > { %v326_v1 = vld [vmem:[#allocation5 + $0x390] sm:$0xff]  ;;  %v228_v2 = vld [vmem:[#allocation5 + $0x80] sm:$0xff]  ;;  %v1294_v3 = vpack.c.bf16 %v235_v59, %v229_v58  ;;  %v333_v5 = vld [vmem:[#allocation5 + $0x3c8] sm:$0xff] }
  0x6a   : > { %1125 = vmatpush1.bf16.msra.mxu1 %v1124_v28  ;;  %580 = vmatprep.mubr.f32.mxu1 %v1631_v57  ;;  %v234_v4 = vld [vmem:[#allocation5 + $0xb0] sm:$0xff]  ;;  %v339_v6 = vld [vmem:[#allocation5 + $0x3f8] sm:$0xff]  ;;  %v241_v7 = vld [vmem:[#allocation5 + $0xe8] sm:$0xff]  ;;  %v1136_v10 = vpack.c.bf16 %v326_v1, %v320_v0 }
  0x6b   : > { %1189 = vmatpush1.bf16.msra.mxu0 %v1188_v32  ;;  %1127 = vmatprep.subr.bf16.mxu1 %v1126_v33  ;;  %v247_v8 = vld [vmem:[#allocation5 + $0x118] sm:$0xff]  ;;  %v1296_v11 = vpack.c.bf16 %v234_v4, %v228_v2  ;;  %v1138_v12 = vpack.c.bf16 %v339_v6, %v333_v5  ;;  %v332_v13 = vld [vmem:[#allocation5 + $0x3c0] sm:$0xff]  ;;  %v338_v14 = vld [vmem:[#allocation5 + $0x3f0] sm:$0xff] }
  0x6c   : > { %1191 = vmatprep.subr.bf16.mxu0 %v1190_v38  ;;  %v240_v16 = vld [vmem:[#allocation5 + $0xe0] sm:$0xff]  ;;  %v1298_v17 = vpack.c.bf16 %v247_v8, %v241_v7  ;;  %v246_v18 = vld [vmem:[#allocation5 + $0x110] sm:$0xff]  ;;  %v345_v19 = vld [vmem:[#allocation5 + $0x428] sm:$0xff]  ;;  %v1140_v23 = vpack.c.bf16 %v338_v14, %v332_v13 }
  0x6d   : > { %v351_v20 = vld [vmem:[#allocation5 + $0x458] sm:$0xff]  ;;  %v253_v21 = vld [vmem:[#allocation5 + $0x148] sm:$0xff]  ;;  %v1300_v24 = vpack.c.bf16 %v246_v18, %v240_v16  ;;  %v344_v26 = vld [vmem:[#allocation5 + $0x420] sm:$0xff] }
  0x6e   : > { %1129 = vmatpush1.bf16.msra.mxu1 %v1128_v45  ;;  %v259_v22 = vld [vmem:[#allocation5 + $0x178] sm:$0xff]  ;;  %v1142_v25 = vpack.c.bf16 %v351_v20, %v345_v19  ;;  %v350_v27 = vld [vmem:[#allocation5 + $0x450] sm:$0xff]  ;;  %v252_v28 = vld [vmem:[#allocation5 + $0x140] sm:$0xff] }
  0x6f   : > { %1193 = vmatpush1.bf16.msra.mxu0 %v1192_v48  ;;  %1131 = vmatprep.subr.bf16.mxu1 %v1130_v49  ;;  %v1302_v29 = vpack.c.bf16 %v259_v22, %v253_v21  ;;  %v258_v30 = vld [vmem:[#allocation5 + $0x170] sm:$0xff]  ;;  %v357_v32 = vld [vmem:[#allocation5 + $0x488] sm:$0xff]  ;;  %v363_v33 = vld [vmem:[#allocation5 + $0x4b8] sm:$0xff]  ;;  %v1144_v36 = vpack.c.bf16 %v350_v27, %v344_v26 }
  0x70   : > { %1291 = vmatprep.subr.bf16.mxu0 %v1290_v53  ;;  %v265_v34 = vld [vmem:[#allocation5 + $0x1a8] sm:$0xff]  ;;  %v271_v35 = vld [vmem:[#allocation5 + $0x1d8] sm:$0xff]  ;;  %v1304_v37 = vpack.c.bf16 %v258_v30, %v252_v28  ;;  %v1146_v38 = vpack.c.bf16 %v363_v33, %v357_v32  ;;  %v356_v39 = vld [vmem:[#allocation5 + $0x480] sm:$0xff] }
  0x71   : > { %v362_v40 = vld [vmem:[#allocation5 + $0x4b0] sm:$0xff]  ;;  %v264_v41 = vld [vmem:[#allocation5 + $0x1a0] sm:$0xff]  ;;  %v1306_v42 = vpack.c.bf16 %v271_v35, %v265_v34  ;;  %v369_v44 = vld [vmem:[#allocation5 + $0x4e8] sm:$0xff] }
  0x72   : > { %1133 = vmatpush1.bf16.msra.mxu1 %v1132_v60  ;;  %652 = vmatmul.mubr.f32.vlgmr.msra.gmra.mrb[0].mxu0 %v1634_v61  ;;  %v270_v43 = vld [vmem:[#allocation5 + $0x1d0] sm:$0xff]  ;;  %v375_v45 = vld [vmem:[#allocation5 + $0x518] sm:$0xff]  ;;  %v277_v47 = vld [vmem:[#allocation5 + $0x208] sm:$0xff]  ;;  %v1148_v49 = vpack.c.bf16 %v362_v40, %v356_v39 }
  0x73   : > { %1293 = vmatpush1.bf16.msra.mxu0 %v1292_v62  ;;  %1135 = vmatprep.subr.bf16.mxu1 %v1134_v63  ;;  %v283_v48 = vld [vmem:[#allocation5 + $0x238] sm:$0xff]  ;;  %v1308_v50 = vpack.c.bf16 %v270_v43, %v264_v41  ;;  %v1150_v51 = vpack.c.bf16 %v375_v45, %v369_v44  ;;  %v368_v52 = vld [vmem:[#allocation5 + $0x4e0] sm:$0xff]  ;;  %v374_v53 = vld [vmem:[#allocation5 + $0x510] sm:$0xff] }
  0x74   : > { %1295 = vmatprep.subr.bf16.mxu0 %v1294_v3  ;;  %864 = vmatprep.mubr.f32.mxu0 %v1631_v57  ;;  %v276_v54 = vld [vmem:[#allocation5 + $0x200] sm:$0xff]  ;;  %v1310_v55 = vpack.c.bf16 %v283_v48, %v277_v47  ;;  %v282_v56 = vld [vmem:[#allocation5 + $0x230] sm:$0xff]  ;;  %v381_v58 = vld [vmem:[#allocation5 + $0x548] sm:$0xff]  ;;  %v1152_v63 = vpack.c.bf16 %v374_v53, %v368_v52 }
  0x75   : > { %v387_v59 = vld [vmem:[#allocation5 + $0x578] sm:$0xff]  ;;  %v289_v60 = vld [vmem:[#allocation5 + $0x268] sm:$0xff]  ;;  %v1312_v0 = vpack.c.bf16 %v282_v56, %v276_v54  ;;  %v380_v2 = vld [vmem:[#allocation5 + $0x540] sm:$0xff] }
  0x76   : > { %1137 = vmatpush1.bf16.msra.mxu1 %v1136_v10  ;;  %v295_v62 = vld [vmem:[#allocation5 + $0x298] sm:$0xff]  ;;  %v1154_v1 = vpack.c.bf16 %v387_v59, %v381_v58  ;;  %v386_v3 = vld [vmem:[#allocation5 + $0x570] sm:$0xff]  ;;  %v288_v4 = vld [vmem:[#allocation5 + $0x260] sm:$0xff] }
  0x77   : > { %1297 = vmatpush1.bf16.msra.mxu0 %v1296_v11  ;;  %1139 = vmatprep.subr.bf16.mxu1 %v1138_v12  ;;  %v1314_v5 = vpack.c.bf16 %v295_v62, %v289_v60  ;;  %v294_v6 = vld [vmem:[#allocation5 + $0x290] sm:$0xff]  ;;  %v393_v7 = vld [vmem:[#allocation5 + $0x5a8] sm:$0xff]  ;;  %v399_v8 = vld [vmem:[#allocation5 + $0x5d8] sm:$0xff]  ;;  %v1156_v12 = vpack.c.bf16 %v386_v3, %v380_v2 }
  0x78   : > { %1299 = vmatprep.subr.bf16.mxu0 %v1298_v17  ;;  %v301_v10 = vld [vmem:[#allocation5 + $0x2c8] sm:$0xff]  ;;  %v307_v11 = vld [vmem:[#allocation5 + $0x2f8] sm:$0xff]  ;;  %v1316_v13 = vpack.c.bf16 %v294_v6, %v288_v4  ;;  %v1158_v14 = vpack.c.bf16 %v399_v8, %v393_v7  ;;  %v392_v16 = vld [vmem:[#allocation5 + $0x5a0] sm:$0xff] }
  0x79   : > { %v398_v17 = vld [vmem:[#allocation5 + $0x5d0] sm:$0xff]  ;;  %v300_v18 = vld [vmem:[#allocation5 + $0x2c0] sm:$0xff]  ;;  %v1318_v19 = vpack.c.bf16 %v307_v11, %v301_v10  ;;  %v215_v21 = vld [vmem:[#allocation5 + $0x18] sm:$0xff] }
  0x7a   : > { %1141 = vmatpush1.bf16.msra.mxu1 %v1140_v23  ;;  %v306_v20 = vld [vmem:[#allocation5 + $0x2f0] sm:$0xff]  ;;  %v221_v22 = vld [vmem:[#allocation5 + $0x48] sm:$0xff]  ;;  %v503_v23 = vsub.s32 0, %v1624_v31  ;;  %v1160_v26 = vpack.c.bf16 %v398_v17, %v392_v16  ;;  %v220_v30 = vld [vmem:[#allocation5 + $0x40] sm:$0xff] }
  0x7b   : > { %1301 = vmatpush1.bf16.msra.mxu0 %v1300_v24  ;;  %1143 = vmatprep.subr.bf16.mxu1 %v1142_v25  ;;  %v313_v24 = vld [vmem:[#allocation5 + $0x328] sm:$0xff]  ;;  %v319_v25 = vld [vmem:[#allocation5 + $0x358] sm:$0xff]  ;;  %v1320_v27 = vpack.c.bf16 %v306_v20, %v300_v18  ;;  %v1194_v28 = vpack.c.bf16 %v221_v22, %v215_v21  ;;  %v312_v32 = vld [vmem:[#allocation5 + $0x320] sm:$0xff] }
  0x7c   : > { %1303 = vmatprep.subr.bf16.mxu0 %v1302_v29  ;;  %v214_v29 = vld [vmem:[#allocation5 + $0x10] sm:$0xff]  ;;  %v1322_v33 = vpack.c.bf16 %v319_v25, %v313_v24  ;;  %v227_v35 = vld [vmem:[#allocation5 + $0x78] sm:$0xff]  ;;  %v232_v44 = vld [vmem:[#allocation5 + $0xa0] sm:$0xff] }
  0x7d   : > { %v318_v34 = vld [vmem:[#allocation5 + $0x350] sm:$0xff]  ;;  %v331_v39 = vld [vmem:[#allocation5 + $0x3b8] sm:$0xff]  ;;  %v1196_v40 = vpack.c.bf16 %v220_v30, %v214_v29  ;;  %v324_v45 = vld [vmem:[#allocation5 + $0x380] sm:$0xff] }
  0x7e   : > { %1145 = vmatpush1.bf16.msra.mxu1 %v1144_v36  ;;  %v233_v36 = vld [vmem:[#allocation5 + $0xa8] sm:$0xff]  ;;  %v1324_v41 = vpack.c.bf16 %v318_v34, %v312_v32  ;;  %v226_v43 = vld [vmem:[#allocation5 + $0x70] sm:$0xff]  ;;  %v343_v52 = vld [vmem:[#allocation5 + $0x418] sm:$0xff] }
  0x7f   : > { %1305 = vmatpush1.bf16.msra.mxu0 %v1304_v37  ;;  %1147 = vmatprep.subr.bf16.mxu1 %v1146_v38  ;;  %v1641_v37 = vrot.slane %v1627_v46, %v503_v23  ;;  %v325_v38 = vld [vmem:[#allocation5 + $0x388] sm:$0xff]  ;;  %v330_v48 = vld [vmem:[#allocation5 + $0x3b0] sm:$0xff]  ;;  %v1200_v53 = vpack.c.bf16 %v232_v44, %v226_v43  ;;  %v244_v58 = vld [vmem:[#allocation5 + $0x100] sm:$0xff] }
  0x80   : > { %1307 = vmatprep.subr.bf16.mxu0 %v1306_v42  ;;  %v1198_v42 = vpack.c.bf16 %v233_v36, %v227_v35  ;;  %v1326_v47 = vpack.c.bf16 %v331_v39, %v325_v38  ;;  %v1328_v54 = vpack.c.bf16 %v330_v48, %v324_v45  ;;  %v238_v56 = vld [vmem:[#allocation5 + $0xd0] sm:$0xff]  ;;  %v336_v59 = vld [vmem:[#allocation5 + $0x3e0] sm:$0xff]  ;;  %v355_v2 = vld [vmem:[#allocation5 + $0x478] sm:$0xff] }
  0x81   : > { %v342_v62 = vld [vmem:[#allocation5 + $0x410] sm:$0xff]  ;;  %v1204_v3 = vpack.c.bf16 %v244_v58, %v238_v56  ;;  %v256_v6 = vld [vmem:[#allocation5 + $0x160] sm:$0xff]  ;;  %v263_v11 = vld [vmem:[#allocation5 + $0x198] sm:$0xff] }
  0x82   : > { %1149 = vmatpush1.bf16.msra.mxu1 %v1148_v49  ;;  %v239_v49 = vld [vmem:[#allocation5 + $0xd8] sm:$0xff]  ;;  %v1332_v4 = vpack.c.bf16 %v342_v62, %v336_v59  ;;  %v348_v7 = vld [vmem:[#allocation5 + $0x440] sm:$0xff]  ;;  %v354_v10 = vld [vmem:[#allocation5 + $0x470] sm:$0xff] }
  0x83   : > { %1309 = vmatpush1.bf16.msra.mxu0 %v1308_v50  ;;  %1151 = vmatprep.subr.bf16.mxu1 %v1150_v51  ;;  %v245_v50 = vld [vmem:[#allocation5 + $0x108] sm:$0xff]  ;;  %v1336_v17 = vpack.c.bf16 %v354_v10, %v348_v7  ;;  %v268_v20 = vld [vmem:[#allocation5 + $0x1c0] sm:$0xff]  ;;  %v366_v23 = vld [vmem:[#allocation5 + $0x4d0] sm:$0xff] }
  0x84   : > { %1311 = vmatprep.subr.bf16.mxu0 %v1310_v55  ;;  %v337_v51 = vld [vmem:[#allocation5 + $0x3e8] sm:$0xff]  ;;  %v1202_v55 = vpack.c.bf16 %v245_v50, %v239_v49  ;;  %v360_v21 = vld [vmem:[#allocation5 + $0x4a0] sm:$0xff]  ;;  %v275_v24 = vld [vmem:[#allocation5 + $0x1f8] sm:$0xff] }
  0x85   : > { %v1330_v60 = vpack.c.bf16 %v343_v52, %v337_v51  ;;  %v281_v25 = vld [vmem:[#allocation5 + $0x228] sm:$0xff]  ;;  %v1340_v29 = vpack.c.bf16 %v366_v23, %v360_v21  ;;  %v274_v32 = vld [vmem:[#allocation5 + $0x1f0] sm:$0xff]  ;;  %v372_v34 = vld [vmem:[#allocation5 + $0x500] sm:$0xff] }
  0x86   : > { %1153 = vmatpush1.bf16.msra.mxu1 %v1152_v63  ;;  %v251_v63 = vld [vmem:[#allocation5 + $0x138] sm:$0xff]  ;;  %v1214_v30 = vpack.c.bf16 %v281_v25, %v275_v24  ;;  %v378_v36 = vld [vmem:[#allocation5 + $0x530] sm:$0xff]  ;;  %v293_v39 = vld [vmem:[#allocation5 + $0x288] sm:$0xff] }
  0x87   : > { %1313 = vmatpush1.bf16.msra.mxu0 %v1312_v0  ;;  %1155 = vmatprep.subr.bf16.mxu1 %v1154_v1  ;;  %v257_v0 = vld [vmem:[#allocation5 + $0x168] sm:$0xff]  ;;  %v287_v38 = vld [vmem:[#allocation5 + $0x258] sm:$0xff]  ;;  %v1344_v43 = vpack.c.bf16 %v378_v36, %v372_v34  ;;  %v286_v45 = vld [vmem:[#allocation5 + $0x250] sm:$0xff] }
  0x88   : > { %1315 = vmatprep.subr.bf16.mxu0 %v1314_v5  ;;  %v349_v1 = vld [vmem:[#allocation5 + $0x448] sm:$0xff]  ;;  %v250_v5 = vld [vmem:[#allocation5 + $0x130] sm:$0xff]  ;;  %v1218_v44 = vpack.c.bf16 %v293_v39, %v287_v38  ;;  %v384_v48 = vld [vmem:[#allocation5 + $0x560] sm:$0xff] }
  0x89   : > { %v1334_v8 = vpack.c.bf16 %v355_v2, %v349_v1  ;;  %v1208_v16 = vpack.c.bf16 %v256_v6, %v250_v5  ;;  %v390_v50 = vld [vmem:[#allocation5 + $0x590] sm:$0xff]  ;;  %v299_v51 = vld [vmem:[#allocation5 + $0x2b8] sm:$0xff]  ;;  %v305_v52 = vld [vmem:[#allocation5 + $0x2e8] sm:$0xff] }
  0x8a   : > { %1157 = vmatpush1.bf16.msra.mxu1 %v1156_v12  ;;  %v269_v12 = vld [vmem:[#allocation5 + $0x1c8] sm:$0xff]  ;;  %v1348_v56 = vpack.c.bf16 %v390_v50, %v384_v48  ;;  %v1222_v58 = vpack.c.bf16 %v305_v52, %v299_v51  ;;  %v298_v59 = vld [vmem:[#allocation5 + $0x2b0] sm:$0xff]  ;;  %v396_v62 = vld [vmem:[#allocation5 + $0x5c0] sm:$0xff] }
  0x8b   : > { %1317 = vmatpush1.bf16.msra.mxu0 %v1316_v13  ;;  %1159 = vmatprep.subr.bf16.mxu1 %v1158_v14  ;;  %v361_v13 = vld [vmem:[#allocation5 + $0x4a8] sm:$0xff]  ;;  %v367_v14 = vld [vmem:[#allocation5 + $0x4d8] sm:$0xff]  ;;  %v1210_v18 = vpack.c.bf16 %v269_v12, %v263_v11  ;;  %v310_v7 = vld [vmem:[#allocation5 + $0x310] sm:$0xff] }
  0x8c   : > { %1319 = vmatprep.subr.bf16.mxu0 %v1318_v19  ;;  %v262_v19 = vld [vmem:[#allocation5 + $0x190] sm:$0xff]  ;;  %v1338_v22 = vpack.c.bf16 %v367_v14, %v361_v13  ;;  %v311_v1 = vld [vmem:[#allocation5 + $0x318] sm:$0xff]  ;;  %v317_v2 = vld [vmem:[#allocation5 + $0x348] sm:$0xff] }
  0x8d   : > { %v1226_v6 = vpack.c.bf16 %v317_v2, %v311_v1  ;;  %v408_v10 = vld [vmem:[#allocation5 + $0x620] sm:$0xff]  ;;  %v414_v12 = vld [vmem:[#allocation5 + $0x650] sm:$0xff]  ;;  %v323_v13 = vld [vmem:[#allocation5 + $0x378] sm:$0xff] }
  0x8e   : > { %1161 = vmatpush1.bf16.msra.mxu1 %v1160_v26  ;;  %v373_v26 = vld [vmem:[#allocation5 + $0x508] sm:$0xff]  ;;  %v322_v21 = vld [vmem:[#allocation5 + $0x370] sm:$0xff]  ;;  %v420_v23 = vld [vmem:[#allocation5 + $0x680] sm:$0xff] }
  0x8f   : > { %1321 = vmatpush1.bf16.msra.mxu0 %v1320_v27  ;;  %1195 = vmatprep.subr.bf16.mxu1 %v1194_v28  ;;  %v379_v27 = vld [vmem:[#allocation5 + $0x538] sm:$0xff]  ;;  %v1212_v28 = vpack.c.bf16 %v268_v20, %v262_v19  ;;  %v329_v14 = vld [vmem:[#allocation5 + $0x3a8] sm:$0xff]  ;;  %v1356_v19 = vpack.c.bf16 %v414_v12, %v408_v10  ;;  %v426_v25 = vld [vmem:[#allocation5 + $0x6b0] sm:$0xff] }
  0x90   : > { %1323 = vmatprep.subr.bf16.mxu0 %v1322_v33  ;;  %v280_v33 = vld [vmem:[#allocation5 + $0x220] sm:$0xff]  ;;  %v1342_v35 = vpack.c.bf16 %v379_v27, %v373_v26  ;;  %v1230_v20 = vpack.c.bf16 %v329_v14, %v323_v13  ;;  %v335_v26 = vld [vmem:[#allocation5 + $0x3d8] sm:$0xff]  ;;  %v341_v27 = vld [vmem:[#allocation5 + $0x408] sm:$0xff] }
  0x91   : > { %581 = vmatmul.mubr.f32.vlgmr.msra.gmra.mrb[0].mxu1 %v1641_v37  ;;  %v334_v34 = vld [vmem:[#allocation5 + $0x3d0] sm:$0xff]  ;;  %v432_v36 = vld [vmem:[#allocation5 + $0x6e0] sm:$0xff] }
  0x92   : > { %1197 = vmatpush1.bf16.msra.mxu1 %v1196_v40  ;;  %722 = vmatprep.mubr.f32.mxu1 %v1631_v57  ;;  %v1206_v57 = vpack.c.bf16 %v257_v0, %v251_v63  ;;  %v385_v40 = vld [vmem:[#allocation5 + $0x568] sm:$0xff]  ;;  %v402_v0 = vld [vmem:[#allocation5 + $0x5f0] sm:$0xff]  ;;  %v444_v50 = vld [vmem:[#allocation5 + $0x740] sm:$0xff] }
  0x93   : > { %1325 = vmatpush1.bf16.msra.mxu0 %v1324_v41  ;;  %1199 = vmatprep.subr.bf16.mxu1 %v1198_v42  ;;  %v391_v41 = vld [vmem:[#allocation5 + $0x598] sm:$0xff]  ;;  %v1216_v42 = vpack.c.bf16 %v280_v33, %v274_v32  ;;  %v1352_v5 = vpack.c.bf16 %v402_v0, %v396_v62  ;;  %v1360_v32 = vpack.c.bf16 %v426_v25, %v420_v23  ;;  %v438_v39 = vld [vmem:[#allocation5 + $0x710] sm:$0xff]  ;;  %v456_v0 = vld [vmem:[#allocation5 + $0x7a0] sm:$0xff] }
  0x94   : > { %1327 = vmatprep.subr.bf16.mxu0 %v1326_v47  ;;  %v292_v47 = vld [vmem:[#allocation5 + $0x280] sm:$0xff]  ;;  %v1346_v49 = vpack.c.bf16 %v391_v41, %v385_v40  ;;  %v1234_v33 = vpack.c.bf16 %v341_v27, %v335_v26  ;;  %v347_v40 = vld [vmem:[#allocation5 + $0x438] sm:$0xff]  ;;  %v353_v41 = vld [vmem:[#allocation5 + $0x468] sm:$0xff] }
  0x95   : > { %v346_v48 = vld [vmem:[#allocation5 + $0x430] sm:$0xff]  ;;  %v468_v12 = vld [vmem:[#allocation5 + $0x800] sm:$0xff] }
  0x96   : > { %1201 = vmatpush1.bf16.msra.mxu1 %v1200_v53  ;;  %v397_v53 = vld [vmem:[#allocation5 + $0x5c8] sm:$0xff]  ;;  %v450_v52 = vld [vmem:[#allocation5 + $0x770] sm:$0xff]  ;;  %v480_v25 = vld [vmem:[#allocation5 + $0x860] sm:$0xff] }
  0x97   : > { %1329 = vmatpush1.bf16.msra.mxu0 %v1328_v54  ;;  %1203 = vmatprep.subr.bf16.mxu1 %v1202_v55  ;;  %v403_v54 = vld [vmem:[#allocation5 + $0x5f8] sm:$0xff]  ;;  %v1220_v55 = vpack.c.bf16 %v292_v47, %v286_v45  ;;  %v1364_v45 = vpack.c.bf16 %v438_v39, %v432_v36  ;;  %v1238_v47 = vpack.c.bf16 %v353_v41, %v347_v40  ;;  %v358_v62 = vld [vmem:[#allocation5 + $0x490] sm:$0xff]  ;;  %v492_v39 = vld [vmem:[#allocation5 + $0x8c0] sm:$0xff] }
  0x98   : > { %1331 = vmatprep.subr.bf16.mxu0 %v1330_v60  ;;  %v304_v60 = vld [vmem:[#allocation5 + $0x2e0] sm:$0xff]  ;;  %v1350_v63 = vpack.c.bf16 %v403_v54, %v397_v53  ;;  %v359_v53 = vld [vmem:[#allocation5 + $0x498] sm:$0xff]  ;;  %v365_v54 = vld [vmem:[#allocation5 + $0x4c8] sm:$0xff] }
  0x99   : > { %v462_v2 = vld [vmem:[#allocation5 + $0x7d0] sm:$0xff] }
  0x9a   : > { %1205 = vmatpush1.bf16.msra.mxu1 %v1204_v3  ;;  %v409_v3 = vld [vmem:[#allocation5 + $0x628] sm:$0xff]  ;;  %v370_v10 = vld [vmem:[#allocation5 + $0x4f0] sm:$0xff] }
  0x9b   : > { %1333 = vmatpush1.bf16.msra.mxu0 %v1332_v4  ;;  %1207 = vmatprep.subr.bf16.mxu1 %v1206_v57  ;;  %v415_v4 = vld [vmem:[#allocation5 + $0x658] sm:$0xff]  ;;  %v1224_v57 = vpack.c.bf16 %v304_v60, %v298_v59  ;;  %v1368_v59 = vpack.c.bf16 %v450_v52, %v444_v50  ;;  %v1242_v60 = vpack.c.bf16 %v365_v54, %v359_v53  ;;  %v474_v14 = vld [vmem:[#allocation5 + $0x830] sm:$0xff] }
  0x9c   : > { %1335 = vmatprep.subr.bf16.mxu0 %v1334_v8  ;;  %v316_v8 = vld [vmem:[#allocation5 + $0x340] sm:$0xff]  ;;  %v1354_v11 = vpack.c.bf16 %v415_v4, %v409_v3  ;;  %v371_v3 = vld [vmem:[#allocation5 + $0x4f8] sm:$0xff]  ;;  %v377_v4 = vld [vmem:[#allocation5 + $0x528] sm:$0xff] }
  0x9d   : > { %v382_v23 = vld [vmem:[#allocation5 + $0x550] sm:$0xff]  ;;  %v419_v50 = vld [vmem:[#allocation5 + $0x678] sm:$0xff] }
  0x9e   : > { %1209 = vmatpush1.bf16.msra.mxu1 %v1208_v16  ;;  %v421_v16 = vld [vmem:[#allocation5 + $0x688] sm:$0xff]  ;;  %v486_v27 = vld [vmem:[#allocation5 + $0x890] sm:$0xff] }
  0x9f   : > { %1337 = vmatpush1.bf16.msra.mxu0 %v1336_v17  ;;  %1211 = vmatprep.subr.bf16.mxu1 %v1210_v18  ;;  %v427_v17 = vld [vmem:[#allocation5 + $0x6b8] sm:$0xff]  ;;  %v1228_v18 = vpack.c.bf16 %v316_v8, %v310_v7  ;;  %v1372_v7 = vpack.c.bf16 %v462_v2, %v456_v0  ;;  %v1246_v8 = vpack.c.bf16 %v377_v4, %v371_v3  ;;  %v394_v36 = vld [vmem:[#allocation5 + $0x5b0] sm:$0xff] }
  0xa0   : > { %1339 = vmatprep.subr.bf16.mxu0 %v1338_v22  ;;  %v328_v22 = vld [vmem:[#allocation5 + $0x3a0] sm:$0xff]  ;;  %v1358_v24 = vpack.c.bf16 %v427_v17, %v421_v16  ;;  %v383_v16 = vld [vmem:[#allocation5 + $0x558] sm:$0xff]  ;;  %v389_v17 = vld [vmem:[#allocation5 + $0x588] sm:$0xff] }
  0xa1   : > { %v498_v41 = vld [vmem:[#allocation5 + $0x8f0] sm:$0xff]  ;;  %v443_v0 = vld [vmem:[#allocation5 + $0x738] sm:$0xff] }
  0xa2   : > { %1213 = vmatpush1.bf16.msra.mxu1 %v1212_v28  ;;  %v433_v28 = vld [vmem:[#allocation5 + $0x6e8] sm:$0xff]  ;;  %v418_v54 = vld [vmem:[#allocation5 + $0x670] sm:$0xff] }
  0xa3   : > { %1341 = vmatpush1.bf16.msra.mxu0 %v1340_v29  ;;  %1215 = vmatprep.subr.bf16.mxu1 %v1214_v30  ;;  %v439_v29 = vld [vmem:[#allocation5 + $0x718] sm:$0xff]  ;;  %v1232_v30 = vpack.c.bf16 %v328_v22, %v322_v21  ;;  %v1376_v21 = vpack.c.bf16 %v474_v14, %v468_v12  ;;  %v1250_v22 = vpack.c.bf16 %v389_v17, %v383_v16  ;;  %v442_v4 = vld [vmem:[#allocation5 + $0x730] sm:$0xff]  ;;  %v473_v12 = vld [vmem:[#allocation5 + $0x828] sm:$0xff] }
  0xa4   : > { %1343 = vmatprep.subr.bf16.mxu0 %v1342_v35  ;;  %v340_v35 = vld [vmem:[#allocation5 + $0x400] sm:$0xff]  ;;  %v1362_v38 = vpack.c.bf16 %v439_v29, %v433_v28  ;;  %v395_v28 = vld [vmem:[#allocation5 + $0x5b8] sm:$0xff]  ;;  %v401_v29 = vld [vmem:[#allocation5 + $0x5e8] sm:$0xff] }
  0xa5   : > { %v466_v14 = vld [vmem:[#allocation5 + $0x7f0] sm:$0xff]  ;;  %v472_v16 = vld [vmem:[#allocation5 + $0x820] sm:$0xff]  ;;  %v479_v17 = vld [vmem:[#allocation5 + $0x858] sm:$0xff] }
  0xa6   : > { %1217 = vmatpush1.bf16.msra.mxu1 %v1216_v42  ;;  %v445_v42 = vld [vmem:[#allocation5 + $0x748] sm:$0xff] }
  0xa7   : > { %1345 = vmatpush1.bf16.msra.mxu0 %v1344_v43  ;;  %1219 = vmatprep.subr.bf16.mxu1 %v1218_v44  ;;  %v451_v43 = vld [vmem:[#allocation5 + $0x778] sm:$0xff]  ;;  %v1236_v44 = vpack.c.bf16 %v340_v35, %v334_v34  ;;  %v1380_v34 = vpack.c.bf16 %v486_v27, %v480_v25  ;;  %v1254_v35 = vpack.c.bf16 %v401_v29, %v395_v28  ;;  %v490_v27 = vld [vmem:[#allocation5 + $0x8b0] sm:$0xff]  ;;  %v496_v28 = vld [vmem:[#allocation5 + $0x8e0] sm:$0xff] }
  0xa8   : > { %1347 = vmatprep.subr.bf16.mxu0 %v1346_v49  ;;  %v352_v49 = vld [vmem:[#allocation5 + $0x460] sm:$0xff]  ;;  %v1366_v51 = vpack.c.bf16 %v451_v43, %v445_v42  ;;  %v407_v42 = vld [vmem:[#allocation5 + $0x618] sm:$0xff]  ;;  %v413_v43 = vld [vmem:[#allocation5 + $0x648] sm:$0xff]  ;;  %v1288_v29 = vpack.c.bf16 %v496_v28, %v490_v27 }
  0xaa   : > { %1221 = vmatpush1.bf16.msra.mxu1 %v1220_v55  ;;  %v457_v55 = vld [vmem:[#allocation5 + $0x7a8] sm:$0xff] }
  0xab   : > { %1349 = vmatpush1.bf16.msra.mxu0 %v1348_v56  ;;  %1223 = vmatprep.subr.bf16.mxu1 %v1222_v58  ;;  %v463_v56 = vld [vmem:[#allocation5 + $0x7d8] sm:$0xff]  ;;  %v1240_v58 = vpack.c.bf16 %v352_v49, %v346_v48  ;;  %v406_v48 = vld [vmem:[#allocation5 + $0x610] sm:$0xff]  ;;  %v412_v49 = vld [vmem:[#allocation5 + $0x640] sm:$0xff] }
  0xac   : > { %1351 = vmatprep.subr.bf16.mxu0 %v1350_v63  ;;  %v364_v63 = vld [vmem:[#allocation5 + $0x4c0] sm:$0xff]  ;;  %v1370_v1 = vpack.c.bf16 %v463_v56, %v457_v55  ;;  %v1260_v52 = vpack.c.bf16 %v412_v49, %v406_v48  ;;  %v431_v56 = vld [vmem:[#allocation5 + $0x6d8] sm:$0xff] }
  0xad   : > { %v424_v55 = vld [vmem:[#allocation5 + $0x6a0] sm:$0xff] }
  0xae   : > { %1225 = vmatpush1.bf16.msra.mxu1 %v1224_v57  ;;  %v469_v57 = vld [vmem:[#allocation5 + $0x808] sm:$0xff] }
  0xaf   : > { %1353 = vmatpush1.bf16.msra.mxu0 %v1352_v5  ;;  %1227 = vmatprep.subr.bf16.mxu1 %v1226_v6  ;;  %v475_v5 = vld [vmem:[#allocation5 + $0x838] sm:$0xff]  ;;  %v1244_v6 = vpack.c.bf16 %v364_v63, %v358_v62  ;;  %v430_v62 = vld [vmem:[#allocation5 + $0x6d0] sm:$0xff]  ;;  %v436_v63 = vld [vmem:[#allocation5 + $0x700] sm:$0xff] }
  0xb0   : > { %1355 = vmatprep.subr.bf16.mxu0 %v1354_v11  ;;  %v376_v11 = vld [vmem:[#allocation5 + $0x520] sm:$0xff]  ;;  %v1374_v13 = vpack.c.bf16 %v475_v5, %v469_v57  ;;  %v1268_v2 = vpack.c.bf16 %v436_v63, %v430_v62  ;;  %v455_v5 = vld [vmem:[#allocation5 + $0x798] sm:$0xff] }
  0xb1   : > { %v448_v57 = vld [vmem:[#allocation5 + $0x760] sm:$0xff]  ;;  %v207_v62 = vld [vmem:[#allocation3 + $0x2] ss:$8 sm:$0x7] }
  0xb2   : > { %1229 = vmatpush1.bf16.msra.mxu1 %v1228_v18  ;;  %865 = vmatmul.mubr.f32.vlgmr.msra.gmra.mrb[2].mxu0 %v1641_v37  ;;  %v481_v18 = vld [vmem:[#allocation5 + $0x868] sm:$0xff] }
  0xb3   : > { %1357 = vmatpush1.bf16.msra.mxu0 %v1356_v19  ;;  %1231 = vmatprep.subr.bf16.mxu1 %v1230_v20  ;;  %v487_v19 = vld [vmem:[#allocation5 + $0x898] sm:$0xff]  ;;  %v1248_v20 = vpack.c.bf16 %v376_v11, %v370_v10  ;;  %v460_v10 = vld [vmem:[#allocation5 + $0x7c0] sm:$0xff] }
  0xb4   : > { %1359 = vmatprep.subr.bf16.mxu0 %v1358_v24  ;;  %935 = vmatprep.mubr.f32.mxu0 %v1502_v9  ;;  %v388_v24 = vld [vmem:[#allocation5 + $0x580] sm:$0xff]  ;;  %v1378_v26 = vpack.c.bf16 %v487_v19, %v481_v18  ;;  %v467_v11 = vld [vmem:[#allocation5 + $0x7f8] sm:$0xff]  ;;  %v485_v18 = vld [vmem:[#allocation5 + $0x888] sm:$0xff]  ;;  %v1280_v19 = vpack.c.bf16 %v472_v16, %v466_v14 }
  0xb6   : > { %1233 = vmatpush1.bf16.msra.mxu1 %v1232_v30  ;;  %v493_v30 = vld [vmem:[#allocation5 + $0x8c8] sm:$0xff] }
  0xb7   : > { %1361 = vmatpush1.bf16.msra.mxu0 %v1360_v32  ;;  %1235 = vmatprep.subr.bf16.mxu1 %v1234_v33  ;;  %v499_v32 = vld [vmem:[#allocation5 + $0x8f8] sm:$0xff]  ;;  %v1252_v33 = vpack.c.bf16 %v388_v24, %v382_v23  ;;  %v497_v24 = vld [vmem:[#allocation5 + $0x8e8] sm:$0xff] }
  0xb8   : > { %1363 = vmatprep.subr.bf16.mxu0 %v1362_v38  ;;  %v400_v38 = vld [vmem:[#allocation5 + $0x5e0] sm:$0xff]  ;;  %v1382_v40 = vpack.c.bf16 %v499_v32, %v493_v30  ;;  %v491_v23 = vld [vmem:[#allocation5 + $0x8b8] sm:$0xff] }
  0xba   : > { %1237 = vmatpush1.bf16.msra.mxu1 %v1236_v44  ;;  %v1256_v44 = vpack.c.bf16 %v400_v38, %v394_v36 }
  0xbb   : > { %1365 = vmatpush1.bf16.msra.mxu0 %v1364_v45  ;;  %1239 = vmatprep.subr.bf16.mxu1 %v1238_v47  ;;  %v1384_v45 = vpack.c.bf16 %v498_v41, %v492_v39  ;;  %v1258_v47 = vpack.c.bf16 %v413_v43, %v407_v42 }
  0xbc   : > { %1367 = vmatprep.subr.bf16.mxu0 %v1366_v51  ;;  %v425_v51 = vld [vmem:[#allocation5 + $0x6a8] sm:$0xff] }
  0xbd   : > { %v1262_v53 = vpack.c.bf16 %v425_v51, %v419_v50 }
  0xbe   : > { %1241 = vmatpush1.bf16.msra.mxu1 %v1240_v58  ;;  %v437_v58 = vld [vmem:[#allocation5 + $0x708] sm:$0xff] }
  0xbf   : > { %1369 = vmatpush1.bf16.msra.mxu0 %v1368_v59  ;;  %1243 = vmatprep.subr.bf16.mxu1 %v1242_v60  ;;  %v1264_v59 = vpack.c.bf16 %v424_v55, %v418_v54  ;;  %v1266_v60 = vpack.c.bf16 %v437_v58, %v431_v56  ;;  %v945_v55 = vsub.f32 0.0, %v1627_v46 }
  0xc0   : > { %1371 = vmatprep.subr.bf16.mxu0 %v1370_v1  ;;  %v449_v1 = vld [vmem:[#allocation5 + $0x768] sm:$0xff] }
  0xc1   : > { %v1270_v3 = vpack.c.bf16 %v449_v1, %v443_v0 }
  0xc2   : > { %1245 = vmatpush1.bf16.msra.mxu1 %v1244_v6  ;;  %v1272_v6 = vpack.c.bf16 %v448_v57, %v442_v4 }
  0xc3   : > { %1373 = vmatpush1.bf16.msra.mxu0 %v1372_v7  ;;  %1247 = vmatprep.subr.bf16.mxu1 %v1246_v8  ;;  %v454_v8 = vld [vmem:[#allocation5 + $0x790] sm:$0xff] }
  0xc4   : > { %1375 = vmatprep.subr.bf16.mxu0 %v1374_v13  ;;  %v1278_v13 = vpack.c.bf16 %v473_v12, %v467_v11 }
  0xc6   : > { %1249 = vmatpush1.bf16.msra.mxu1 %v1248_v20  ;;  %v1282_v20 = vpack.c.bf16 %v485_v18, %v479_v17 }
  0xc7   : > { %1377 = vmatpush1.bf16.msra.mxu0 %v1376_v21  ;;  %1251 = vmatprep.subr.bf16.mxu1 %v1250_v22  ;;  %v478_v21 = vld [vmem:[#allocation5 + $0x850] sm:$0xff]  ;;  %v484_v22 = vld [vmem:[#allocation5 + $0x880] sm:$0xff] }
  0xc8   : > { %1379 = vmatprep.subr.bf16.mxu0 %v1378_v26  ;;  %v1284_v25 = vpack.c.bf16 %v484_v22, %v478_v21  ;;  %v1286_v26 = vpack.c.bf16 %v497_v24, %v491_v23 }
  0xca   : > { %1253 = vmatpush1.bf16.msra.mxu1 %v1252_v33  ;;  %v1503_v33 = vmov 1966171168  }
  0xcb   : > { %1381 = vmatpush1.bf16.msra.mxu0 %v1380_v34  ;;  %1255 = vmatprep.subr.bf16.mxu1 %v1254_v35  ;;  %v951_v34 = vunpack.c.l.s4 %v1503_v33 }
  0xcc   : > { %1383 = vmatprep.subr.bf16.mxu0 %v1382_v40 }
  0xcd   : > { %v952_v35 = vunpack.c.0.s8 %v951_v34 }
  0xce   : > { %1257 = vmatpush1.bf16.msra.mxu1 %v1256_v44 }
  0xcf   : > { %1385 = vmatpush1.bf16.msra.mxu0 %v1384_v45  ;;  %1259 = vmatprep.subr.bf16.mxu1 %v1258_v47  ;;  %v955_v42 = vsub.s32 %v952_v35, %v1624_v31 }
  0xd1   : > { %723 = vmatmul.mubr.f32.vlgmr.msra.gmra.mrb[2].mxu1 %v1641_v37  ;;  %v461_v37 = vld [vmem:[#allocation5 + $0x7c8] sm:$0xff] }
  0xd2   : > { %1261 = vmatpush1.bf16.msra.mxu1 %v1260_v52  ;;  %936 = vmatmul.mubr.f32.vlgmr.msra.gmra.mrb[2].mxu0 %v1634_v61  ;;  %v1274_v7 = vpack.c.bf16 %v461_v37, %v455_v5 }
  0xd3   : > { %1263 = vmatprep.subr.bf16.mxu1 %v1262_v53  ;;  %793 = vmatprep.mubr.f32.mxu1 %v1502_v9  ;;  %v1276_v9 = vpack.c.bf16 %v460_v10, %v454_v8 }
  0xd6   : > { %1265 = vmatpush1.bf16.msra.mxu1 %v1264_v59 }
  0xd7   : > { %1267 = vmatprep.subr.bf16.mxu1 %v1266_v60 }
  0xda   : > { %1269 = vmatpush1.bf16.msra.mxu1 %v1268_v2 }
  0xdb   : > { %1271 = vmatprep.subr.bf16.mxu1 %v1270_v3 }
  0xde   : > { %1273 = vmatpush1.bf16.msra.mxu1 %v1272_v6 }
  0xdf   : > { %1275 = vmatprep.subr.bf16.mxu1 %v1274_v7 }
  0xe2   : > { %1277 = vmatpush1.bf16.msra.mxu1 %v1276_v9 }
  0xe3   : > { %1279 = vmatprep.subr.bf16.mxu1 %v1278_v13 }
  0xe6   : > { %1281 = vmatpush1.bf16.msra.mxu1 %v1280_v19 }
  0xe7   : > { %1283 = vmatprep.subr.bf16.mxu1 %v1282_v20 }
  0xea   : > { %1285 = vmatpush1.bf16.msra.mxu1 %v1284_v25 }
  0xeb   : > { %1287 = vmatprep.subr.bf16.mxu1 %v1286_v26 }
  0xee   : > { %1289 = vmatpush1.bf16.msra.mxu1 %v1288_v29 }
  0xf1   : > { %794 = vmatmul.mubr.f32.vlgmr.msra.gmra.mrb[2].mxu1 %v1634_v61 }
 0x145   : > { %v653_v30 = vpop.f32.mrb[0].mxu0 }
 0x146   : > { %v655_v32 = vpop.f32.mrb[1].mxu0 }
 0x164   : > { %v582_v36 = vpop.f32.mrb[0].mxu1 }
 0x165   : > { %v654_v38 = vadd.f32 %v653_v30, %v582_v36  ;;  %v584_v39 = vpop.f32.mrb[1].mxu1 }
 0x166   : > { %v656_v40 = vadd.f32 %v655_v32, %v584_v39 }
 0x167   : > { %v942_v41 = vmax.f32 %v654_v38, 0.0 }
 0x168   : > { %v943_v43 = vmax.f32 %v656_v40, 0.0 }
 0x16a   : > { %v949_v44 = vcombine.low %v942_v41, %v943_v43 }
 0x16c   : > { %v956_v45 = vrot.slane %v949_v44, %v955_v42 }
 0x1a5   : > { %v937_v47 = vpop.f32.mrb[2].mxu0 }
 0x1a6   : > { %v939_v48 = vpop.f32.mrb[3].mxu0 }
 0x1a7   : > { %v991_v49 = vrot.slane %v939_v48, %v955_v42 }
 0x1c4   : > { %v795_v50 = vpop.f32.mrb[2].mxu1 }
 0x1c5   : > { %v944_v61 = vmax.f32 %v795_v50, 0.0  ;;  %v797_v51 = vpop.f32.mrb[3].mxu1 }
 0x1c6   : > { %v977_v52 = vcombine.low %v797_v51, %v937_v47 }
 0x1c7   : > { %v963_v53 = vrot.slane %v944_v61, %v955_v42 }
 0x1c8   : > { %v984_v54 = vrot.slane %v977_v52, %v955_v42 }
 0x1c9   : > { %v964_v56 = vcombine.low %v956_v45, %v963_v53 }
 0x1ca   : > { %v992_v58 = vcombine.low %v984_v54, %v991_v49 }
 0x1cb   : > { %v971_v59 = vrot.slane %v964_v56, %v955_v42 }
 0x1cc   : > { %v999_v60 = vrot.slane %v992_v58, %v955_v42 }
 0x1cd   : > { %v973_v31 = vadd.f32 %v971_v59, %v945_v55 }
 0x1cf   : > { %v1001_v63 = vadd.f32 %v999_v60, %v973_v31 }
 0x1d1   : > { %v1002_v0 = vmul.f32 %v1001_v63, %v207_v62 }
 0x1d3   : > { %v1003_v1 = vadd.f32 %v1002_v0, %v1627_v46 }
 0x1d5   : > { %v1004_v2 = vmax.f32 %v1003_v1, 0.0 }
 0x1d7   : > { %1009 = vst.msk [vmem:[#allocation2] sm:$0x7] %vm1007_vm1, %v1004_v2  ;;  %1010 = vst.msk [vmem:[%s1617_s24] sm:$0x7] %vm1007_vm1, %v1004_v2 }
 0x1d8 PF: > { %s15_s12 = sadd.s32 1, %s1496_s12  }
 0x1d9   : > { %p12_p10 = scmp.ge.s32.totalorder %s15_s12, 10  }
 0x1db   :  { %14 = sbr.rel (!%p12_p10) target bundleno = 2 (0x2), region = 77 }
 0x1e2   :  { %1030 = vsyncpa [#allocation4], 1 }
 0x1e3   :  { %1032 = vsyncpa [#allocation4 + $0x1], 1 }
 0x1e4   :  { %1033 = vsyncpa [#allocation6], 1 }

</bundles_post_ra>
